<compile_context>
chip_gen: v7x
topology: tpu7x:2x2x1
jax: 0.10.0
libtpu: 0.0.40
codegen_flags: <defaults>
</compile_context>

<pallas_src>
import functools

import jax
import jax.numpy as jnp
from jax import lax
from jax.experimental import pallas as pl
from jax.experimental.pallas import tpu as pltpu


def _round_up(x, m):
    return ((x + m - 1) // m) * m


def _pad_to(x, shape):
    pads = [(0, t - s) for s, t in zip(x.shape, shape)]
    if any(p[1] for p in pads):
        x = jnp.pad(x, pads)
    return x


def _vmem_capacity_bytes():
    """Per-core VMEM capacity; conservative (v7x) fallback if unqueryable."""
    try:
        cap = getattr(pltpu.get_tpu_info(), "vmem_capacity_bytes", None)
        if cap:
            return int(cap)
    except Exception:
        pass
    return 64 * 1024 * 1024


def _choose_query_tile(n_q, n_k, c_in_p, c_hid_p, c_vo_p, budget, tq_cap=None):
    """Pick the query-tile length TQ (and padded query count) against a
    chip-aware VMEM budget.  The kernel is VMEM-traffic/EUP bound over the
    (TQ, N) logits tile (all MXU contractions are only ~8 deep), so we simply
    maximize TQ within budget."""
    c_kvo = c_hid_p + c_vo_p
    fixed = 2 * (c_in_p * n_k * 2)          # double-buffered freq block (bf16)
    fixed += c_kvo * n_k * 2                # persistent k / vo cache (bf16)
    fixed += c_kvo * n_k * 4                # f32 temporary during cache fill
    fixed += c_kvo * c_in_p * 2 + c_hid_p * c_in_p * 2
    fixed += 4 * (c_kvo + c_hid_p + c_in_p)
    per_q = 8 * n_k                         # logits f32 + bf16 logits + p bf16
    per_q += 2 * 2 * c_in_p * 4             # rgb + out blocks (double-buffered)
    per_q += (2 * c_hid_p + c_vo_p) * 4     # q / yd columns
    avail = budget - fixed
    tq = avail // per_q if avail > 0 else 128
    tq = max(128, min(int(tq), 8192))
    if tq_cap is not None:
        tq = min(tq, int(tq_cap))
    tq = max(128, (tq // 128) * 128)
    if tq >= n_q:
        return n_q, n_q                     # single full-extent query tile
    n_pad_q = _round_up(n_q, tq)
    return tq, n_pad_q


def _cma_kernel(rgb_ref, freq_ref,
                w1_ref, b1_ref,
                wkvo_ref, bkvo_ref,
                bvo_ref,
                out_ref,
                kvo_cache_ref,
                *, c_in, c_in_p, c_hid_p, n_valid):
    # --- once per batch element (q == 0): project freq into keys and the
    # conv4-folded values (+ the ones-row that later yields the softmax
    # denominator), cache in VMEM for all query tiles of this batch element.
    @pl.when(pl.program_id(1) == 0)
    def _():
        kvo = jnp.dot(wkvo_ref[...], freq_ref[0],
                      preferred_element_type=jnp.float32) + bkvo_ref[...]
        kvo_cache_ref[...] = kvo.astype(jnp.bfloat16)

    rgb_f32 = rgb_ref[0]                       # (C_in_p, TQ), kept f32 for residual

    # conv1 (attention scale folded into weights/bias): q = (C_hid_p, TQ).
    q = jnp.dot(w1_ref[...], rgb_f32.astype(jnp.bfloat16),
                preferred_element_type=jnp.float32) + b1_ref[...]

    k = kvo_cache_ref[:c_hid_p, :]             # (C_hid_p, N_pad_k) bf16
    vo = kvo_cache_ref[c_hid_p:, :]            # (C_vo_p,  N_pad_k) bf16 (+ ones row)

    # attention logits (TQ, N_pad_k): contract the hidden dim directly
    # (no explicit transpose), bf16 operands, f32 accumulation.
    attn = lax.dot_general(q.astype(jnp.bfloat16), k,
                           dimension_numbers=(((0,), (0,)), ((), ())),
                           preferred_element_type=jnp.float32)

    n_pad_k = attn.shape[-1]
    if n_valid < n_pad_k:                      # static: mask padded key columns
        col = lax.broadcasted_iota(jnp.int32, attn.shape, 1)
        attn = jnp.where(col < n_valid, attn, -1e30)

    # numerically-stable, *unnormalized* softmax; exp on the bf16 EUP path.
    attn = attn - jnp.max(attn, axis=-1, keepdims=True)
    p = jnp.exp(attn.astype(jnp.bfloat16))     # (TQ, N_pad_k) bf16

    # value matmul: contract the key axis.  Row `c_in` of `vo` is all ones,
    # so row `c_in` of the result is the softmax denominator, already laid
    # out with TQ on lanes (no cross-layout reduce/transpose needed).
    yd = lax.dot_general(vo, p,
                         dimension_numbers=(((1,), (1,)), ((), ())),
                         preferred_element_type=jnp.float32)   # (C_vo_p, TQ)

    recip = pl.reciprocal(yd[c_in:c_in + 1, :], approx=True)   # (1, TQ)
    y = yd[:c_in_p, :] * recip + bvo_ref[...]   # deferred softmax norm + folded bias
    y = jnp.where(y >= 0.0, y, 0.2 * y)         # LeakyReLU(0.2)

    out_ref[0] = rgb_f32 + y                    # residual (f32)


def cma_block_forward(rgb, freq, params, *, tq_cap=None):
    """rgb, freq: (B, C_in, H, W) float32 NCHW.  Returns (B, C_in, H, W)."""
    B, C_in, H, W = rgb.shape
    N = H * W
    C_hid = params["w1"].shape[0]              # conv weights stored (out, in)
    C_out = params["w4"].shape[0]
    assert C_out == C_in, "residual requires out_channel == in_channel"

    # channel padding (channels live on the sublane axis).
    C_in_p = _round_up(C_in, 8)
    C_hid_p = _round_up(C_hid, 8)
    C_vo_p = _round_up(C_in + 1, 8)            # folded value rows + ones row

    # Fold eval-mode BatchNorm into conv4.
    eps = 1e-5
    bn_scale = params["bn_gamma"] / jnp.sqrt(params["bn_var"] + eps)
    bn_bias = params["bn_beta"] - params["bn_mean"] * bn_scale
    w4_eff = params["w4"] * bn_scale[:, None]
    b4_eff = params["b4"] * bn_scale + bn_bias

    # Fold the attention scale into conv1.
    scale = float(C_hid) ** (-0.5)
    w1_eff = params["w1"] * scale
    b1_eff = params["b1"] * scale

    # Fold conv4(+BN) into the value projection.  Softmax rows sum to 1, so
    # conv3's bias folds into a constant output bias (tiny extra error from
    # the approximate reciprocal — rows sum to 1 ± ~2e-4 — is negligible).
    w_vo = w4_eff @ params["w3"]               # (C_in, C_in)
    b_vo = w4_eff @ params["b3"] + b4_eff      # (C_in,)

    w1_p = _pad_to(w1_eff, (C_hid_p, C_in_p)).astype(jnp.bfloat16)
    b1_p = _pad_to(b1_eff, (C_hid_p,))[:, None].astype(jnp.float32)

    # Fused key / folded-value projection weights: [w2 ; w4_eff@w3 ; ones-row].
    wkvo_p = jnp.concatenate(
        [_pad_to(params["w2"], (C_hid_p, C_in_p)),
         _pad_to(w_vo, (C_vo_p, C_in_p))], axis=0).astype(jnp.bfloat16)
    # ones-row implemented as a zero weight row with bias 1 -> the value
    # matmul's row C_in becomes the softmax denominator.
    b_ones = jnp.zeros((C_vo_p,), jnp.float32).at[C_in].set(1.0)
    bkvo_p = jnp.concatenate(
        [_pad_to(params["b2"], (C_hid_p,)), b_ones],
        axis=0)[:, None].astype(jnp.float32)

    bvo_p = _pad_to(b_vo, (C_in_p,))[:, None].astype(jnp.float32)

    # Channel-major activations (free reshape of NCHW); lane-pad the key axis.
    N_pad_k = _round_up(N, 128)
    rgb_cm = rgb.reshape(B, C_in, N)
    freq_cm = freq.reshape(B, C_in, N)

    vmem_cap = _vmem_capacity_bytes()
    budget = int(0.6 * vmem_cap)
    vmem_limit = int(min(0.9 * vmem_cap, 112 * 1024 * 1024))
    TQ, N_pad_q = _choose_query_tile(N, N_pad_k, C_in_p, C_hid_p, C_vo_p,
                                     budget, tq_cap)
    num_q = N_pad_q // TQ

    rgb_p = _pad_to(rgb_cm, (B, C_in_p, N_pad_q)).astype(jnp.float32)
    freq_p = _pad_to(freq_cm, (B, C_in_p, N_pad_k)).astype(jnp.bfloat16)

    kernel = functools.partial(_cma_kernel, c_in=C_in, c_in_p=C_in_p,
                               c_hid_p=C_hid_p, n_valid=N)

    def const_spec(shape):
        return pl.BlockSpec(shape, lambda b, q: (0,) * len(shape))

    flops = 2 * B * (N_pad_q * C_in_p * C_hid_p                 # q projection
                     + N_pad_k * C_in_p * (C_hid_p + C_vo_p)    # cached k/vo proj
                     + N_pad_q * N_pad_k * C_hid_p              # logits
                     + N_pad_q * N_pad_k * C_vo_p)              # value matmul
    transcendentals = B * N_pad_q * (N_pad_k + 1)
    bytes_accessed = (rgb_p.size * 4 + freq_p.size * 2
                      + B * C_in_p * N_pad_q * 4
                      + (w1_p.size + wkvo_p.size) * 2
                      + (b1_p.size + bkvo_p.size + bvo_p.size) * 4)
    cost = pl.CostEstimate(flops=int(flops),
                           transcendentals=int(transcendentals),
                           bytes_accessed=int(bytes_accessed))

    out_flat = pl.pallas_call(
        kernel,
        out_shape=jax.ShapeDtypeStruct((B, C_in_p, N_pad_q), jnp.float32),
        grid_spec=pltpu.PrefetchScalarGridSpec(
            num_scalar_prefetch=0,
            grid=(B, num_q),
            in_specs=[
                pl.BlockSpec((1, C_in_p, TQ), lambda b, q: (b, 0, q)),       # rgb
                pl.BlockSpec((1, C_in_p, N_pad_k), lambda b, q: (b, 0, 0)),  # freq
                const_spec((C_hid_p, C_in_p)),             # w1 (scale folded)
                const_spec((C_hid_p, 1)),                  # b1 (scale folded)
                const_spec((C_hid_p + C_vo_p, C_in_p)),    # [w2 ; w4@w3 ; 0]
                const_spec((C_hid_p + C_vo_p, 1)),         # [b2 ; ones row]
                const_spec((C_in_p, 1)),                   # b_vo (conv4+BN folded)
            ],
            out_specs=pl.BlockSpec((1, C_in_p, TQ), lambda b, q: (b, 0, q)),
            scratch_shapes=[
                # persistent per-batch-element key / folded-value cache
                pltpu.VMEM((C_hid_p + C_vo_p, N_pad_k), jnp.bfloat16),
            ],
        ),
        compiler_params=pltpu.CompilerParams(
            # q axis must be sequential ("arbitrary"): the k/vo cache is
            # filled at q == 0 and reused by the later query tiles of that b.
            dimension_semantics=("parallel", "arbitrary"),
            vmem_limit_bytes=vmem_limit),
        cost_estimate=cost,
    )(rgb_p, freq_p, w1_p, b1_p, wkvo_p, bkvo_p, bvo_p)

    return out_flat[:, :C_in, :N].reshape(B, C_in, H, W)


def _reference_forward(rgb, freq, params):
    """Pure-JAX reference mirroring the PyTorch forward (eval-mode BN)."""
    B, C_in, H, W = rgb.shape
    N = H * W
    C_hid = params["w1"].shape[0]
    rgb_cm = rgb.reshape(B, C_in, N)
    freq_cm = freq.reshape(B, C_in, N)
    q = jnp.einsum("hc,bcn->bnh", params["w1"], rgb_cm) + params["b1"]
    k = jnp.einsum("hc,bcn->bnh", params["w2"], freq_cm) + params["b2"]
    v = jnp.einsum("hc,bcn->bnh", params["w3"], freq_cm) + params["b3"]
    attn = jnp.einsum("bnh,bmh->bnm", q, k) * (float(C_hid) ** -0.5)
    m = jax.nn.softmax(attn, axis=-1)
    z = jnp.einsum("bnm,bmh->bnh", m, v)
    y = jnp.einsum("oh,bnh->bno", params["w4"], z) + params["b4"]
    eps = 1e-5
    y = (y - params["bn_mean"]) / jnp.sqrt(params["bn_var"] + eps)
    y = y * params["bn_gamma"] + params["bn_beta"]
    y = jnp.where(y >= 0.0, y, 0.2 * y)
    out = rgb_cm + jnp.transpose(y, (0, 2, 1))
    return out.reshape(B, C_in, H, W)


def make_params(key, in_channel, hidden_channel, out_channel):
    ks = jax.random.split(key, 12)

    def w(k, shape):
        return (0.1 * jax.random.normal(k, shape)).astype(jnp.float32)

    return {
        # 1x1 conv weights stored PyTorch-style (out_channels, in_channels).
        "w1": w(ks[0], (hidden_channel, in_channel)),
        "b1": w(ks[1], (hidden_channel,)),
        "w2": w(ks[2], (hidden_channel, in_channel)),
        "b2": w(ks[3], (hidden_channel,)),
        "w3": w(ks[4], (hidden_channel, in_channel)),
        "b3": w(ks[5], (hidden_channel,)),
        "w4": w(ks[6], (out_channel, hidden_channel)),
        "b4": w(ks[7], (out_channel,)),
        "bn_gamma": (1.0 + 0.1 * jax.random.normal(ks[8], (out_channel,))).astype(jnp.float32),
        "bn_beta": (0.05 * jax.random.normal(ks[9], (out_channel,))).astype(jnp.float32),
        "bn_mean": (0.1 * jax.random.normal(ks[10], (out_channel,))).astype(jnp.float32),
        "bn_var": (1.0 + 0.1 * jnp.abs(jax.random.normal(ks[11], (out_channel,)))).astype(jnp.float32),
    }


if __name__ == "__main__":
    key = jax.random.PRNGKey(0)
    ks = jax.random.split(key, 5)

    B, C_in, H, W = 2, 4, 8, 8      # residual requires out_channel == in_channel
    C_hid, C_out = 8, C_in

    params = make_params(ks[0], C_in, C_hid, C_out)

    # Config 1: N = 64 (key axis padded to 128 -> exercises the logit mask).
    rgb = jax.random.normal(ks[1], (B, C_in, H, W), dtype=jnp.float32)
    freq = jax.random.normal(ks[2], (B, C_in, H, W), dtype=jnp.float32)
    out = jax.block_until_ready(cma_block_forward(rgb, freq, params))
    ref = _reference_forward(rgb, freq, params)
    assert out.shape == (B, C_in, H, W)
    err = float(jnp.max(jnp.abs(out - ref)))
    assert jnp.allclose(out, ref, atol=3e-2, rtol=3e-2), (
        "mismatch vs reference (config 1), max abs err = %f" % err)

    # Config 2: N = 256 with a forced 128-wide query tile -> 2 query tiles per
    # batch element, exercising the cached k/vo reuse along the "arbitrary"
    # grid axis (no key-axis padding / mask on this path).
    H2 = W2 = 16
    rgb2 = jax.random.normal(ks[3], (B, C_in, H2, W2), dtype=jnp.float32)
    freq2 = jax.random.normal(ks[4], (B, C_in, H2, W2), dtype=jnp.float32)
    out2 = jax.block_until_ready(cma_block_forward(rgb2, freq2, params, tq_cap=128))
    ref2 = _reference_forward(rgb2, freq2, params)
    err2 = float(jnp.max(jnp.abs(out2 - ref2)))
    assert jnp.allclose(out2, ref2, atol=3e-2, rtol=3e-2), (
        "mismatch vs reference (config 2), max abs err = %f" % err2)

    print("KERNEL_OK")
</pallas_src>

<mosaic_0001>
module attributes {stable_mosaic.version = 11 : i64} {
  func.func @_cma_kernel(%arg0: i32, %arg1: i32, %arg2: memref<1x8x64xf32, #tpu.memory_space<vmem>>, %arg3: memref<1x8x128xbf16, #tpu.memory_space<vmem>>, %arg4: memref<8x8xbf16, #tpu.memory_space<vmem>>, %arg5: memref<8x1xf32, #tpu.memory_space<vmem>>, %arg6: memref<16x8xbf16, #tpu.memory_space<vmem>>, %arg7: memref<16x1xf32, #tpu.memory_space<vmem>>, %arg8: memref<8x1xf32, #tpu.memory_space<vmem>>, %arg9: memref<1x8x64xf32, #tpu.memory_space<vmem>>, %arg10: memref<16x128xbf16, #tpu.memory_space<vmem>>) attributes {dimension_semantics = [#tpu.dimension_semantics<parallel>, #tpu.dimension_semantics<arbitrary>], iteration_bounds = array<i64: 2, 1>, scalar_prefetch = 0 : i64, scratch_operands = 1 : i64, tpu.core_type = #tpu.core_type<tc>, window_params = [{transform_indices = @transform_0, window_bounds = array<i64: 1, 8, 64>}, {transform_indices = @transform_1, window_bounds = array<i64: 1, 8, 128>}, {pipeline_mode = #tpu.pipeline_mode<synchronous>, transform_indices = @transform_2, window_bounds = array<i64: 8, 8>}, {pipeline_mode = #tpu.pipeline_mode<synchronous>, transform_indices = @transform_3, window_bounds = array<i64: 8, 1>}, {pipeline_mode = #tpu.pipeline_mode<synchronous>, transform_indices = @transform_4, window_bounds = array<i64: 16, 8>}, {pipeline_mode = #tpu.pipeline_mode<synchronous>, transform_indices = @transform_5, window_bounds = array<i64: 16, 1>}, {pipeline_mode = #tpu.pipeline_mode<synchronous>, transform_indices = @transform_6, window_bounds = array<i64: 8, 1>}, {transform_indices = @transform_7, window_bounds = array<i64: 1, 8, 64>}]} {
    %c0_i32 = arith.constant 0 : i32
    %0 = arith.cmpi eq, %arg1, %c0_i32 : i32
    %1 = arith.extui %0 : i1 to i32
    %c0_i32_0 = arith.constant 0 : i32
    %2 = arith.cmpi ne, %1, %c0_i32_0 : i32
    scf.if %2 {
      %c0_21 = arith.constant 0 : index
      %c0_22 = arith.constant 0 : index
      %43 = vector.load %arg6[%c0_21, %c0_22] : memref<16x8xbf16, #tpu.memory_space<vmem>>, vector<16x8xbf16>
      %c0_23 = arith.constant 0 : index
      %c0_24 = arith.constant 0 : index
      %c0_25 = arith.constant 0 : index
      %44 = vector.load %arg3[%c0_23, %c0_24, %c0_25] : memref<1x8x128xbf16, #tpu.memory_space<vmem>>, vector<1x8x128xbf16>
      %45 = vector.shape_cast %44 : vector<1x8x128xbf16> to vector<8x128xbf16>
      %cst_26 = arith.constant dense<0.000000e+00> : vector<16x128xf32>
      %46 = tpu.matmul %43, %45, %cst_26 {dimension_numbers = #tpu.dot_dimension_numbers<[1], [0], [0], [1], [0, 0, 1, 1], [], []>} : vector<16x8xbf16>, vector<8x128xbf16>, vector<16x128xf32> -> vector<16x128xf32>
      %c0_27 = arith.constant 0 : index
      %c0_28 = arith.constant 0 : index
      %47 = vector.load %arg7[%c0_27, %c0_28] : memref<16x1xf32, #tpu.memory_space<vmem>>, vector<16x1xf32>
      %48 = vector.broadcast %47 : vector<16x1xf32> to vector<16x128xf32>
      %49 = arith.addf %46, %48 : vector<16x128xf32>
      %50 = arith.truncf %49 : vector<16x128xf32> to vector<16x128xbf16>
      %c0_29 = arith.constant 0 : index
      %c0_30 = arith.constant 0 : index
      %51 = vector.load %arg10[%c0_29, %c0_30] : memref<16x128xbf16, #tpu.memory_space<vmem>>, vector<16x128xbf16>
      tpu.vector_store %arg10[%c0_29, %c0_30], %50 {strides = array<i32>} : memref<16x128xbf16, #tpu.memory_space<vmem>>, vector<16x128xbf16>,
    } else {
    }
    %c0 = arith.constant 0 : index
    %c0_1 = arith.constant 0 : index
    %c0_2 = arith.constant 0 : index
    %3 = vector.load %arg2[%c0, %c0_1, %c0_2] : memref<1x8x64xf32, #tpu.memory_space<vmem>>, vector<1x8x64xf32>
    %4 = vector.shape_cast %3 : vector<1x8x64xf32> to vector<8x64xf32>
    %c0_3 = arith.constant 0 : index
    %c0_4 = arith.constant 0 : index
    %5 = vector.load %arg4[%c0_3, %c0_4] : memref<8x8xbf16, #tpu.memory_space<vmem>>, vector<8x8xbf16>
    %6 = arith.truncf %4 : vector<8x64xf32> to vector<8x64xbf16>
    %cst = arith.constant dense<0.000000e+00> : vector<8x64xf32>
    %7 = tpu.matmul %5, %6, %cst {dimension_numbers = #tpu.dot_dimension_numbers<[1], [0], [0], [1], [0, 0, 1, 1], [], []>} : vector<8x8xbf16>, vector<8x64xbf16>, vector<8x64xf32> -> vector<8x64xf32>
    %c0_5 = arith.constant 0 : index
    %c0_6 = arith.constant 0 : index
    %8 = vector.load %arg5[%c0_5, %c0_6] : memref<8x1xf32, #tpu.memory_space<vmem>>, vector<8x1xf32>
    %9 = vector.broadcast %8 : vector<8x1xf32> to vector<8x64xf32>
    %10 = arith.addf %7, %9 : vector<8x64xf32>
    %c0_7 = arith.constant 0 : index
    %c0_8 = arith.constant 0 : index
    %11 = vector.load %arg10[%c0_7, %c0_8] : memref<16x128xbf16, #tpu.memory_space<vmem>>, vector<8x128xbf16>
    %c8 = arith.constant 8 : index
    %c0_9 = arith.constant 0 : index
    %12 = vector.load %arg10[%c8, %c0_9] : memref<16x128xbf16, #tpu.memory_space<vmem>>, vector<8x128xbf16>
    %13 = arith.truncf %10 : vector<8x64xf32> to vector<8x64xbf16>
    %cst_10 = arith.constant dense<0.000000e+00> : vector<64x128xf32>
    %14 = tpu.matmul %13, %11, %cst_10 {dimension_numbers = #tpu.dot_dimension_numbers<[0], [0], [1], [1], [0, 1, 1, 1], [], []>} : vector<8x64xbf16>, vector<8x128xbf16>, vector<64x128xf32> -> vector<64x128xf32>
    %15 = tpu.iota {dimensions = array<i32: 1>} : vector<64x128xi32>
    %c64_i32 = arith.constant 64 : i32
    %16 = vector.broadcast %c64_i32 : i32 to vector<64x128xi32>
    %17 = arith.cmpi slt, %15, %16 : vector<64x128xi32>
    %cst_11 = arith.constant -1.000000e+30 : f32
    %18 = vector.broadcast %cst_11 : f32 to vector<64x128xf32>
    %19 = arith.select %17, %14, %18 : vector<64x128xi1>, vector<64x128xf32>
    %cst_12 = arith.constant dense<0xFF800000> : vector<64xf32>
    %20 = vector.multi_reduction <maximumf>, %19, %cst_12 [1] : vector<64x128xf32> to vector<64xf32>
    %21 = vector.shape_cast %20 : vector<64xf32> to vector<64x1xf32>
    %22 = vector.broadcast %21 : vector<64x1xf32> to vector<64x128xf32>
    %23 = arith.subf %19, %22 : vector<64x128xf32>
    %24 = arith.truncf %23 : vector<64x128xf32> to vector<64x128xbf16>
    %25 = math.exp %24 : vector<64x128xbf16>
    %cst_13 = arith.constant dense<0.000000e+00> : vector<8x64xf32>
    %26 = tpu.matmul %12, %25, %cst_13 {dimension_numbers = #tpu.dot_dimension_numbers<[1], [1], [0], [0], [0, 0, 1, 0], [], []>} : vector<8x128xbf16>, vector<64x128xbf16>, vector<8x64xf32> -> vector<8x64xf32>
    %27 = vector.extract_strided_slice %26 {offsets = [4, 0], sizes = [1, 64], strides = [1, 1]} : vector<8x64xf32> to vector<1x64xf32>
    %28 = tpu.reciprocal %27 {approx = true} : vector<1x64xf32> -> vector<1x64xf32>
    %29 = vector.broadcast %28 : vector<1x64xf32> to vector<8x64xf32>
    %30 = arith.mulf %26, %29 : vector<8x64xf32>
    %c0_14 = arith.constant 0 : index
    %c0_15 = arith.constant 0 : index
    %31 = vector.load %arg8[%c0_14, %c0_15] : memref<8x1xf32, #tpu.memory_space<vmem>>, vector<8x1xf32>
    %32 = vector.broadcast %31 : vector<8x1xf32> to vector<8x64xf32>
    %33 = arith.addf %30, %32 : vector<8x64xf32>
    %cst_16 = arith.constant 0.000000e+00 : f32
    %34 = vector.broadcast %cst_16 : f32 to vector<8x64xf32>
    %35 = arith.cmpf oge, %33, %34 : vector<8x64xf32>
    %cst_17 = arith.constant 2.000000e-01 : f32
    %36 = vector.broadcast %cst_17 : f32 to vector<8x64xf32>
    %37 = arith.mulf %36, %33 : vector<8x64xf32>
    %38 = arith.select %35, %33, %37 : vector<8x64xi1>, vector<8x64xf32>
    %39 = arith.addf %4, %38 : vector<8x64xf32>
    %c0_18 = arith.constant 0 : index
    %c0_19 = arith.constant 0 : index
    %c0_20 = arith.constant 0 : index
    %40 = vector.load %arg9[%c0_18, %c0_19, %c0_20] : memref<1x8x64xf32, #tpu.memory_space<vmem>>, vector<1x8x64xf32>
    %41 = vector.shape_cast %40 : vector<1x8x64xf32> to vector<8x64xf32>
    %42 = vector.shape_cast %39 : vector<8x64xf32> to vector<1x8x64xf32>
    tpu.vector_store %arg9[%c0_18, %c0_19, %c0_20], %42 {strides = array<i32>} : memref<1x8x64xf32, #tpu.memory_space<vmem>>, vector<1x8x64xf32>,
    return
  }
  func.func @transform_0(%arg0: i32, %arg1: i32) -> (i32, i32, i32) {
    %c0_i32 = arith.constant 0 : i32
    %c0_i32_0 = arith.constant 0 : i32
    return %arg0, %c0_i32, %arg1 : i32, i32, i32
  }
  func.func @transform_1(%arg0: i32, %arg1: i32) -> (i32, i32, i32) {
    %c0_i32 = arith.constant 0 : i32
    %c0_i32_0 = arith.constant 0 : i32
    %c0_i32_1 = arith.constant 0 : i32
    return %arg0, %c0_i32, %c0_i32_0 : i32, i32, i32
  }
  func.func @transform_2(%arg0: i32, %arg1: i32) -> (i32, i32) {
    %c0_i32 = arith.constant 0 : i32
    %c0_i32_0 = arith.constant 0 : i32
    %c0_i32_1 = arith.constant 0 : i32
    return %c0_i32, %c0_i32_0 : i32, i32
  }
  func.func @transform_3(%arg0: i32, %arg1: i32) -> (i32, i32) {
    %c0_i32 = arith.constant 0 : i32
    %c0_i32_0 = arith.constant 0 : i32
    %c0_i32_1 = arith.constant 0 : i32
    return %c0_i32, %c0_i32_0 : i32, i32
  }
  func.func @transform_4(%arg0: i32, %arg1: i32) -> (i32, i32) {
    %c0_i32 = arith.constant 0 : i32
    %c0_i32_0 = arith.constant 0 : i32
    %c0_i32_1 = arith.constant 0 : i32
    return %c0_i32, %c0_i32_0 : i32, i32
  }
  func.func @transform_5(%arg0: i32, %arg1: i32) -> (i32, i32) {
    %c0_i32 = arith.constant 0 : i32
    %c0_i32_0 = arith.constant 0 : i32
    %c0_i32_1 = arith.constant 0 : i32
    return %c0_i32, %c0_i32_0 : i32, i32
  }
  func.func @transform_6(%arg0: i32, %arg1: i32) -> (i32, i32) {
    %c0_i32 = arith.constant 0 : i32
    %c0_i32_0 = arith.constant 0 : i32
    %c0_i32_1 = arith.constant 0 : i32
    return %c0_i32, %c0_i32_0 : i32, i32
  }
  func.func @transform_7(%arg0: i32, %arg1: i32) -> (i32, i32, i32) {
    %c0_i32 = arith.constant 0 : i32
    %c0_i32_0 = arith.constant 0 : i32
    return %arg0, %c0_i32, %arg1 : i32, i32, i32
  }
}

</mosaic_0001>

<bundles_post_ra>
// kernel: tpu_custom_call.1
= control target key start
LH: loop header
LB: loop body
LE: loop exit
PB: predicated region body
PF: predicated region fallthrough
CT: control target
= control target key end

     0   :  { %12 = vsyncpa [#allocation4], 0  ;;  %s1192_s0 = inlined_call_operand.vmem [shape: f32[2,8,64], index: 0, kind: input, shape index: {}]   ;;  %s1193_s1 = inlined_call_operand.vmem [shape: bf16[2,8,128], index: 1, kind: input, shape index: {}]   ;;  %s1194_s2 = inlined_call_operand.vmem [shape: bf16[8,8], index: 2, kind: input, shape index: {}]   ;;  %s1195_s3 = inlined_call_operand.vmem [shape: f32[8,1], index: 3, kind: input, shape index: {}]   ;;  %s1196_s4 = inlined_call_operand.vmem [shape: bf16[16,8], index: 4, kind: input, shape index: {}]   ;;  %s1197_s5 = inlined_call_operand.vmem [shape: f32[16,1], index: 5, kind: input, shape index: {}]   ;;  %s1198_s6 = inlined_call_operand.vmem [shape: f32[8,1], index: 6, kind: input, shape index: {}]   ;;  %s1199_s7 = inlined_call_operand.hbm [shape: f32[2,8,64], index: 7, kind: output, shape index: {}]  }
   0x1   :  { %14 = vsyncpa [#allocation4 + $0x1], 0  ;;  %s1022_s24 = smov 0   ;;  %s1024_s25 = smov 0  }
   0x2   :  { %s1026_s26 = smov 0   ;;  %s1028_s27 = smov 0  }
   0x3   :  { %s1030_s28 = smov 0   ;;  %s1032_s29 = smov 0  }
   0x4 LB: > { %s759_s30 = sadd.s32 4294967295, %s976_s29   ;;  %s760_s8 = sadd.s32 4294967294, %s976_s29   ;;  %s976_s29 = sphi %s1032_s29, %s20_s29   ;;  %s972_s28 = sphi %s1030_s28, %s1206_s28   ;;  %s968_s27 = sphi %s1028_s27, %s1205_s27   ;;  %s964_s26 = sphi %s1026_s26, %s1204_s26   ;;  %s960_s25 = sphi %s1024_s25, %s1203_s25   ;;  %s956_s24 = sphi %s1022_s24, %s1202_s24  }
   0x5   : > { %s32_s9 = sadd.s32 1, %s972_s28  ;;  %s200_s10 = sadd.s32 1, %s964_s26 }
   0x6   : > { %p34_p0 = scmp.ge.s32.totalorder %s32_s9, 2  ;;  %p210_p1 = scmp.ne.s32.totalorder %s964_s26, %s960_s25 }
   0x7   : > { %p211_p2 = scmp.eq.s32.totalorder %s759_s30, 1  ;;  %p216_p3 = scmp.ne.s32.totalorder %s960_s25, %s956_s24 }
   0x8   : > { %s1208_s9 = smov (%p34_p0, %s32_s9), 0  ;;  %p217_p5 = scmp.eq.s32.totalorder %s760_s8, 1 }
   0x9   : > { %p1062_p4 = por %p211_p2, %p210_p1  ;;  %s195_s12 = ssub.s32 %s972_s28, %s1208_s9 }
   0xa   : > { %p763_p6 = scmp.ge.s32.totalorder %s976_s29, 1  ;;  %p198_p7 = scmp.eq.s32.totalorder %s195_s12, 0 }
   0xb   : > { %p1069_p8 = por %p217_p5, %p216_p3  ;;  %p267_p9 = scmp.lt.s32.totalorder %s976_s29, 3 }
   0xc   : > { %s1075_s14 = scalar_select %p198_p7, %s964_s26, %s200_s10  }
   0xd   : > { %p268_p10 = pnand %p763_p6, %p267_p9 }
   0xe   : > { %p305_p11 = scmp.lt.s32.totalorder (!%p268_p10), %s968_s27, 1  ;;  %v978_v0 = vmov (!%p268_p10), 0.0   ;;  %vm979_vm0 = vmmov (!%p268_p10), 0   ;;  %v395_v1 = vld [vmem:[%s1195_s3] sm:$0xff] (!%p268_p10)  ;;  %v325_v2 = vld [vmem:[%s1197_s5 + $0x8] sm:$0xff] (!%p268_p10)  ;;  %v980_v3 = vmov (!%p268_p10), 0   ;;  %v548_v34 = vlaneseq (!%p268_p10) }
   0xf   : > { %271 = sbr.rel (%p268_p10) target bundleno = 1019 (0x3fb), region = 48  ;;  %792 = vmatprep.subr.bf16.mxu0 (!%p268_p10), %v978_v0  ;;  %794 = vmatprep.mubr.msk.bf16.mxu0 (!%p268_p10), %vm979_vm0, %v978_v0  ;;  %vm345_vm1 = vcmask (!%p268_p10), 1043456   ;;  %v324_v4 = vld [vmem:[%s1197_s5] sm:$0xff] (!%p268_p10)  ;;  %vm341_vm2 = vcmask (!%p268_p10), 64512   ;;  %s302_s23 = sand.u32 (!%p268_p10), 1, %s960_s25   ;;  %vm659_vm5 = vcmask (!%p268_p10), 523264  }
  0x10   : > { %814 = vmatprep.subr.bf16.mxu1 (!%p268_p10), %v978_v0  ;;  %822 = vmatprep.mubr.msk.bf16.mxu1 (!%p268_p10), %vm979_vm0, %v978_v0  ;;  %v887_v8 = vld [vmem:[%s1196_s4] sm:$0xff] (!%p268_p10)   ;;  %v549_v35 = vand.u32 (!%p268_p10), 127, %v548_v34  ;;  %s775_s8 = sshll.u32 (!%p268_p10), %s968_s27, 7  ;;  %s662_s18 = scalar_lea.sflag (!%p268_p10), [#allocation4], %s302_s23 }
  0x11   : > { %885 = vset.pattern.permute.xlu0 (!%p268_p10), %v980_v3  ;;  %886 = vset.pattern.permute.xlu1 (!%p268_p10), %v980_v3  ;;  %v393_v11 = vld [vmem:[%s1194_s2] sm:$0xf] (!%p268_p10) }
  0x12   : > { %398 = vperm.xlu0 (!%p268_p10), %885, %v395_v1   ;;  %333 = vperm.xlu1 (!%p268_p10), %886, %v325_v2   ;;  %vm550_vm3 = vcmp.lt.s32.totalorder (!%p268_p10), %v549_v35, 64  ;;  %v648_v52 = vld [vmem:[%s1198_s6] sm:$0xff] (!%p268_p10) }
  0x16   : > { %s306_s15 = scalar_select %p305_p11, %s968_s27, 1  ;;  %328 = vperm.xlu0 %885, %v324_v4  }
  0x17   : > { %s981_s27 = smov [#allocation3]  }
  0x18   : > { %s765_s20 = sshll.u32 %s306_s15, 3  ;;  %s766_s21 = sshll.u32 %s306_s15, 2 }
  0x19   : > { %s311_s30 = scalar_lea.vmem %s1192_s0, %s765_s20  ;;  %s315_s12 = scalar_lea.vmem %s1193_s1, %s766_s21 }
  0x1a   : > { %v323_v5 = vld [vmem:[%s315_s12] sm:$0xf]  ;;  %s1145_s15 = scalar_lea.hbm %s1199_s7, %s775_s8  ;;  %s902_s20 = sshll.u32 %s981_s27, 4  ;;  %s903_s20 = int_to_ptr.vmem [resolvable:$false] %s902_s20 }
  0x1b   : > { %v1100_v6 = vld [vmem:[%s311_s30] sm:$0xff]  ;;  %v347_v7 = vsel %vm345_vm1, %v323_v5, 0  ;;  %s764_s30 = sshll.u32 %s302_s23, 3  ;;  %s904_s21 = scalar_lea.vmem %s903_s20, 256 }
  0x1c   : > { %v394_v9 = vpack.c.bf16 %v1100_v6, %v1100_v6  ;;  %793 = vmatpush3.bf16.msra.mxu0 %v347_v7  ;;  %s304_s10 = scalar_lea.vmem [#allocation3], %s764_s30 }
  0x1d   : > { %798 = vmatprep.subr.bf16.mxu0 %v978_v0  ;;  %s676_s12 = sshll.u32 %s304_s10, 4  ;;  %s1147_s12 = int_to_ptr.vmem [resolvable:$true] %s676_s12 }
  0x1e   : > { %v407_v10 = vsel %vm345_vm1, %v394_v9, 0  ;;  %s898_s19 = scalar_lea.vmem %s1147_s12, 128  ;;  %p905_p1 = scmp.lt.s32.totalorder %s1147_s12, %s903_s20 }
  0x1f   : > { %795 = vmatmul.mubr.msk.bf16.vlgmr.msra.gmra.mrb[0].mxu0 %vm341_vm2, %v887_v8  ;;  %p899_p12 = scmp.ne.s32.totalorder %s1147_s12, %s898_s19  ;;  %p906_p2 = scmp.lt.s32.totalorder %s904_s21, %s898_s19 }
  0x20   : > { %799 = vmatpush3.bf16.msra.mxu0 %v407_v10  ;;  %800 = vmatprep.mubr.msk.bf16.mxu0 %vm979_vm0, %v978_v0 }
  0x21   : > { %p900_p13 = pnand %p899_p12, %p1062_p4  ;;  %p907_p3 = por %p906_p2, %p905_p1 }
  0x23   : > { %p901_p0 = pneg %p900_p13 }
  0x25   : > { %p908_p5 = pnand %p907_p3, %p901_p0 }
  0x27   : > { %801 = vmatmul.mubr.msk.bf16.vlgmr.msra.gmra.mrb[4].mxu0 %vm341_vm2, %v393_v11 }
  0x91   : > { %v399_v12 = vpop.permute.xlu0 %398  ;;  %v334_v13 = vpop.permute.xlu1 %333 }
  0x95   : > { %v329_v15 = vpop.permute.xlu0 %328 }
  0xf2   : > { %v383_v14 = vpop.f32.mrb[0].mxu0 }
  0xf3   : > { %v796_v16 = vpop.f32.mrb[1].mxu0  ;;  %v384_v18 = vadd.f32 %v383_v14, %v329_v15 }
  0xf4   : > { %v386_v17 = vpop.f32.mrb[2].mxu0 }
  0xf5   : > { %v387_v19 = vadd.f32 %v386_v17, %v334_v13  ;;  %v797_v20 = vpop.f32.mrb[3].mxu0 }
  0xf7   : > { %v390_v21 = vpack.c.bf16 %v387_v19, %v384_v18 }
  0xf9   : > { %391 = vst [vmem:[#allocation2] sm:$0xff] %v390_v21 }
  0xfa   : > { %v443_v22 = vpop.f32.mrb[4].mxu0 }
  0xfb   : > { %v444_v23 = vadd.f32 %v443_v22, %v399_v12  ;;  %v802_v24 = vpop.f32.mrb[5].mxu0 }
  0xfc   : > { %v446_v25 = vpop.f32.mrb[6].mxu0 }
  0xfd   : > { %v451_v26 = vpack.c.bf16 %v444_v23, %v444_v23  ;;  %v803_v27 = vpop.f32.mrb[7].mxu0  ;;  %v644_v25 = vshrl.u32 %v548_v34, 7 }
  0xff   : > { %452 = vxpose.xlu1.c.b16.start.end [1/1] (short) (narrow) %v451_v26, 64  ;;  %v645_v26 = vsub.s32 4, %v644_v25 }
 0x100   : > { %v449_v28 = vld [vmem:[#allocation2] sm:$0xf]  ;;  %v450_v19 = vld [vmem:[#allocation2] sm:$0xf0] }
 0x101   : > { %826 = vmatprep.subr.msk.bf16.mxu0 %vm345_vm1, %v449_v28  ;;  %v481_v29 = vsel %vm345_vm1, %v449_v28, 0  ;;  %v600_v20 = vrot.slane %v450_v19, 4 }
 0x102   : > { %805 = vmatpush3.bf16.msra.mxu0 %v481_v29 }
 0x165   : > { %v460_v30 = vpop.trf.xlu1 }
 0x166   : > { %806 = vmatprep.mubr.msk.bf16.mxu0 %vm341_vm2, %v460_v30 }
 0x169   : > { %v461_v31 = vpop.trf.xlu1 }
 0x16a   : > { %807 = vmatmul.mubr.msk.bf16.vlgmr.msra.gmra.mrb[8].mxu0 %vm341_vm2, %v461_v31 }
 0x16d   : > { %v462_v32 = vpop.trf.xlu1 }
 0x16e   : > { %810 = vmatprep.mubr.msk.bf16.mxu0 %vm341_vm2, %v462_v32 }
 0x171   : > { %v463_v33 = vpop.trf.xlu1 }
 0x172   : > { %811 = vmatmul.mubr.msk.bf16.gmra.mrb[12].mxu0 %vm341_vm2, %v463_v33 }
 0x23d   : > { %v808_v36 = vpop.f32.mrb[8].mxu0 }
 0x23e   : > { %v517_v37 = vpop.f32.mrb[9].mxu0  ;;  %v553_v38 = vsel %vm550_vm3, %v808_v36, -1e+30 }
 0x23f   : > { %563 = vmax.xlane.f32.xlu1 %v553_v38  ;;  %v809_v39 = vpop.f32.mrb[10].mxu0  ;;  %v551_v40 = vsel %vm550_vm3, %v517_v37, -1e+30 }
 0x240   : > { %559 = vmax.xlane.f32.xlu0 %v551_v40  ;;  %v520_v41 = vpop.f32.mrb[11].mxu0  ;;  %v554_v45 = vsel %vm550_vm3, %v809_v39, -1e+30 }
 0x241   : > { %v552_v42 = vsel %vm550_vm3, %v520_v41, -1e+30 }
 0x244   : > { %561 = vmax.xlane.f32.xlu0 %v552_v42 }
 0x245   : > { %v812_v43 = vpop.f32.mrb[12].mxu0 }
 0x246   : > { %v533_v44 = vpop.f32.mrb[13].mxu0  ;;  %v557_v50 = vsel %vm550_vm3, %v812_v43, -1e+30 }
 0x247   : > { %v813_v46 = vpop.f32.mrb[14].mxu0  ;;  %v555_v48 = vsel %vm550_vm3, %v533_v44, -1e+30 }
 0x248   : > { %565 = vmax.xlane.f32.xlu0 %v554_v45  ;;  %v536_v47 = vpop.f32.mrb[15].mxu0  ;;  %v558_v51 = vsel %vm550_vm3, %v813_v46, -1e+30 }
 0x249   : > { %v556_v49 = vsel %vm550_vm3, %v536_v47, -1e+30 }
 0x24c   : > { %567 = vmax.xlane.f32.xlu0 %v555_v48 }
 0x250   : > { %569 = vmax.xlane.f32.xlu0 %v556_v49 }
 0x254   : > { %571 = vmax.xlane.f32.xlu0 %v557_v50 }
 0x258   : > { %573 = vmax.xlane.f32.xlu0 %v558_v51 }
 0x26e   : > { %651 = vperm.xlu0 %885, %v648_v52  }
 0x2cc   : > { %v564_v57 = vpop.xlane.xlu1 %563 }
 0x2cd   : > { %v560_v53 = vpop.xlane.xlu0 %559  ;;  %v577_v60 = vsub.f32 %v553_v38, %v564_v57 }
 0x2ce   : > { %v575_v55 = vsub.f32 %v551_v40, %v560_v53 }
 0x2d1   : > { %v562_v54 = vpop.xlane.xlu0 %561 }
 0x2d2   : > { %v576_v56 = vsub.f32 %v552_v42, %v562_v54 }
 0x2d4   : > { %v583_v58 = vpack.c.bf16 %v576_v56, %v575_v55 }
 0x2d5   : > { %v566_v59 = vpop.xlane.xlu0 %565 }
 0x2d6   : > { %v588_v61 = vmul.bf16 1069105081, %v583_v58  ;;  %v578_v62 = vsub.f32 %v554_v45, %v566_v59 }
 0x2d8   : > { %888 = vpow.bf16 %v588_v61  ;;  %v584_v63 = vpack.c.bf16 %v578_v62, %v577_v60 }
 0x2d9   : > { %v568_v1 = vpop.xlane.xlu0 %567 }
 0x2da   : > { %v591_v2 = vmul.bf16 1069105081, %v584_v63  ;;  %v579_v4 = vsub.f32 %v555_v48, %v568_v1 }
 0x2dc   : > { %890 = vpow.bf16 %v591_v2 }
 0x2dd   : > { %v570_v3 = vpop.xlane.xlu0 %569 }
 0x2de   : > { %v580_v5 = vsub.f32 %v556_v49, %v570_v3 }
 0x2e0   : > { %v585_v7 = vpack.c.bf16 %v580_v5, %v579_v4 }
 0x2e1   : > { %v572_v8 = vpop.xlane.xlu0 %571 }
 0x2e2   : > { %v594_v10 = vmul.bf16 1069105081, %v585_v7  ;;  %v581_v12 = vsub.f32 %v557_v50, %v572_v8 }
 0x2e3   : > { %v889_v9 = vpop.eup %888 }
 0x2e4   : > { %815 = vmatpush3.bf16.xpose.msra.mxu1 %v889_v9  ;;  %892 = vpow.bf16 %v594_v10 }
 0x2e5   : > { %v574_v11 = vpop.xlane.xlu0 %573  ;;  %816 = vmatprep.subr.bf16.mxu1 %v978_v0 }
 0x2e6   : > { %v582_v13 = vsub.f32 %v558_v51, %v574_v11 }
 0x2e7   : > { %v891_v15 = vpop.eup %890 }
 0x2e8   : > { %v586_v14 = vpack.c.bf16 %v582_v13, %v581_v12 }
 0x2ea   : > { %v597_v16 = vmul.bf16 1069105081, %v586_v14 }
 0x2ec   : > { %817 = vmatpush3.bf16.xpose.msra.mxu1 %v891_v15  ;;  %894 = vpow.bf16 %v597_v16 }
 0x2ed   : > { %818 = vmatprep.subr.bf16.mxu1 %v978_v0 }
 0x2ef   : > { %v893_v17 = vpop.eup %892 }
 0x2f4   : > { %819 = vmatpush3.bf16.xpose.msra.mxu1 %v893_v17 }
 0x2f5   : > { %820 = vmatprep.subr.bf16.mxu1 %v978_v0  ;;  %v652_v0 = vpop.permute.xlu0 %651 }
 0x2f7   : > { %v895_v18 = vpop.eup %894 }
 0x2fc   : > { %821 = vmatpush3.bf16.xpose.msra.mxu1 %v895_v18 }
 0x303   : > { %823 = vmatmul.mubr.bf16.vlgmr.msra.gmra.mrb[0].mxu1 %v600_v20 }
 0x3d6   : > { %v636_v21 = vpop.f32.mrb[0].mxu1 }
 0x3d7   : > { %896 = vrcp.f32 %v636_v21  ;;  %v824_v22 = vpop.f32.mrb[1].mxu1 }
 0x3d8   : > { %v639_v23 = vpop.f32.mrb[2].mxu1 }
 0x3d9   : > { %v825_v24 = vpop.f32.mrb[3].mxu1 }
 0x3e1   : > { %v897_v27 = vpop.eup %896 }
 0x3e2   : > { %v646_v28 = vrot.slane %v897_v27, %v645_v26 }
 0x3e4   : > { %v647_v29 = vmul.f32 %v646_v28, %v636_v21 }
 0x3e6   : > { %v654_v30 = vadd.f32 %v652_v0, %v647_v29 }
 0x3e8   : > { %vm655_vm4 = vcmp.ge.f32.partialorder %v654_v30, 0.0  ;;  %v656_v31 = vmul.f32 0.2, %v654_v30 }
 0x3ea   : > { %v657_v32 = vsel %vm655_vm4, %v654_v30, %v656_v31 }
 0x3eb   : > { %v658_v33 = vadd.f32 %v657_v32, %v1100_v6 }
 0x3ed   : > { %660 = vst.msk [vmem:[%s304_s10] sm:$0xff] %vm659_vm5, %v658_v33 }
 0x3ee   : > { %911 = shalt.err (!%p908_p5)
}
 0x3ef   : > { %s912_s22 = scalar_lea.hbm %s1145_s15, 128  ;;  %s916_s8 = scalar_lea.hbm %s1199_s7, 256 }
 0x3f0   : > { %p913_p6 = scmp.ne.s32.totalorder %s1145_s15, %s912_s22  ;;  %p917_p10 = scmp.lt.u32.totalorder %s1145_s15, %s1199_s7 }
 0x3f1   : > { %p918_p11 = scmp.lt.u32.totalorder %s916_s8, %s912_s22  ;;  %p920_p13 = scmp.lt.u32.totalorder %s912_s22, %s1145_s15 }
 0x3f2   : > { %p914_p7 = pnand %p913_p6, %p1062_p4 }
 0x3f3   : > { %p919_p12 = por %p918_p11, %p917_p10 }
 0x3f4   : > { %p915_p9 = pneg %p914_p7 }
 0x3f5   : > { %p921_p0 = por %p920_p13, %p919_p12 }
 0x3f7   : > { %p922_p1 = pnand %p921_p0, %p915_p9 }
 0x3f9   : > { %925 = shalt.err (!%p922_p1)
}
 0x3fa   : > { %827 = dma.vmem_to_hbm [thread:$0]  (%p1062_p4), %s1147_s12, 128, %s1145_s15, %s662_s18  }
 0x3fb PF: > { %p833_p2 = scmp.ge.s32.totalorder %s976_s29, 2  ;;  %s688_s17 = sand.u32 1, %s956_s24  }
 0x3fc   : > { %s689_s19 = scalar_lea.sflag [#allocation4], %s688_s17 }
 0x3fd   : > { %p830_p3 = pnand %p833_p2, %p1069_p8 }
 0x3ff   : > { %951 = dma.done.wait (!%p830_p3), %s689_s19, 128  }
 0x400   : > { %953 = vsyncadd (!%p830_p3), %s689_s19, 4294967168  ;;  %s20_s29 = sadd.s32 1, %s976_s29   ;;  %s1202_s24 = smov %s960_s25 }
 0x401   : > { %p17_p5 = scmp.ge.s32.totalorder %s20_s29, 4   ;;  %s1203_s25 = smov %s964_s26 }
 0x402   : > { %s1204_s26 = smov %s1075_s14  ;;  %s1205_s27 = smov %s972_s28 }
 0x403   : > { %s1206_s28 = smov %s1208_s9  ;;  %19 = sbr.rel (!%p17_p5) target bundleno = 4 (0x4), region = 90 }
 0x40a   :  { %694 = vsyncpa [#allocation4], 1 }
 0x40b   :  { %696 = vsyncpa [#allocation4 + $0x1], 1 }

</bundles_post_ra>
